<compile_context>
chip_gen: v7x
topology: tpu7x:2x2x1
jax: 0.10.0
libtpu: 0.0.40
codegen_flags: <defaults>
</compile_context>

<pallas_src>
import jax
import jax.numpy as jnp
from jax.experimental import pallas as pl
from jax.experimental.pallas import tpu as pltpu

LAYER_SIZES = [4, 3]


def _linear_kernel(x_ref, p_ref, o_ref):
    # x_ref: (B, IN)       in VMEM
    # p_ref: (IN+1, OUT)   in VMEM; rows 0..IN-1 are W^T, row IN is the bias
    # o_ref: (B, OUT)      in VMEM
    in_features = x_ref.shape[1]

    x = x_ref[...].astype(jnp.float32)          # (B, IN)
    p = p_ref[...].astype(jnp.float32)          # (IN+1, OUT)

    # Start from the bias row; it broadcasts (1, OUT) -> (B, OUT) on first add.
    acc = p[in_features:in_features + 1, :]     # (1, OUT)

    # Unrolled-K contraction: y[n, o] = b[o] + sum_k x[n, k] * W^T[k, o].
    # Every intermediate is 2-D (B, OUT): a single vreg, VPU broadcast-mul +
    # add, no 3-D padded intermediates, no XLU lane-reduction / relayout.
    for k in range(in_features):
        acc = acc + x[:, k:k + 1] * p[k:k + 1, :]   # (B,1)*(1,OUT) -> (B,OUT)

    o_ref[...] = acc.astype(o_ref.dtype)


def net_forward(x, weight, bias):
    """Pallas equivalent of Net.forward: x -> Linear(layer_sizes[0], layer_sizes[1]).

    weight is in PyTorch nn.Linear layout (OUT, IN); bias is (OUT,).
    """
    B, IN = x.shape
    OUT, IN_w = weight.shape
    assert IN == IN_w, "feature-dim mismatch"
    assert bias.shape == (OUT,), "bias shape mismatch"

    # Fold the bias into a single params operand: (IN+1, OUT) = [W^T ; b].
    # One tiny one-off host-side concat (XLA fuses it) in exchange for
    # dropping one of the three input DMAs, which dominate cost at this size.
    params = jnp.concatenate([weight.T, bias[None, :]], axis=0)

    vmem = pl.BlockSpec(memory_space=pltpu.MemorySpace.VMEM)
    return pl.pallas_call(
        _linear_kernel,
        out_shape=jax.ShapeDtypeStruct((B, OUT), x.dtype),
        in_specs=[vmem, vmem],
        out_specs=vmem,
    )(x, params)


if __name__ == "__main__":
    key = jax.random.PRNGKey(0)
    k_x, k_w, k_b = jax.random.split(key, 3)

    batch = 8
    in_features, out_features = LAYER_SIZES  # [4, 3]

    # Deterministic synthetic parameters (PyTorch-style shapes for nn.Linear).
    bound = 1.0 / (in_features ** 0.5)
    weight = jax.random.uniform(
        k_w, (out_features, in_features), jnp.float32, -bound, bound
    )
    bias = jax.random.uniform(
        k_b, (out_features,), jnp.float32, -bound, bound
    )

    x = jax.random.normal(k_x, (batch, in_features), jnp.float32)

    y = net_forward(x, weight, bias)
    y = jax.block_until_ready(y)

    # Sanity-check against plain-JAX reference.
    y_ref = x @ weight.T + bias
    assert y.shape == (batch, out_features)
    assert jnp.allclose(y, y_ref, atol=1e-5, rtol=1e-5)

    print("KERNEL_OK")
</pallas_src>

<mosaic_0001>
module attributes {stable_mosaic.version = 11 : i64} {
  func.func @_linear_kernel(%arg0: memref<8x4xf32, #tpu.memory_space<vmem>>, %arg1: memref<5x3xf32, #tpu.memory_space<vmem>>, %arg2: memref<8x3xf32, #tpu.memory_space<vmem>>) attributes {dimension_semantics = [], scalar_prefetch = 0 : i64, scratch_operands = 0 : i64, tpu.core_type = #tpu.core_type<tc>} {
    %c0 = arith.constant 0 : index
    %c0_0 = arith.constant 0 : index
    %0 = vector.load %arg0[%c0, %c0_0] : memref<8x4xf32, #tpu.memory_space<vmem>>, vector<8x4xf32>
    %c0_1 = arith.constant 0 : index
    %c0_2 = arith.constant 0 : index
    %1 = vector.load %arg1[%c0_1, %c0_2] : memref<5x3xf32, #tpu.memory_space<vmem>>, vector<5x3xf32>
    %2 = vector.extract_strided_slice %1 {offsets = [4, 0], sizes = [1, 3], strides = [1, 1]} : vector<5x3xf32> to vector<1x3xf32>
    %3 = vector.extract_strided_slice %0 {offsets = [0, 0], sizes = [8, 1], strides = [1, 1]} : vector<8x4xf32> to vector<8x1xf32>
    %4 = vector.extract_strided_slice %1 {offsets = [0, 0], sizes = [1, 3], strides = [1, 1]} : vector<5x3xf32> to vector<1x3xf32>
    %5 = vector.broadcast %3 : vector<8x1xf32> to vector<8x3xf32>
    %6 = vector.broadcast %4 : vector<1x3xf32> to vector<8x3xf32>
    %7 = arith.mulf %5, %6 : vector<8x3xf32>
    %8 = vector.broadcast %2 : vector<1x3xf32> to vector<8x3xf32>
    %9 = arith.addf %8, %7 : vector<8x3xf32>
    %10 = vector.extract_strided_slice %0 {offsets = [0, 1], sizes = [8, 1], strides = [1, 1]} : vector<8x4xf32> to vector<8x1xf32>
    %11 = vector.extract_strided_slice %1 {offsets = [1, 0], sizes = [1, 3], strides = [1, 1]} : vector<5x3xf32> to vector<1x3xf32>
    %12 = vector.broadcast %10 : vector<8x1xf32> to vector<8x3xf32>
    %13 = vector.broadcast %11 : vector<1x3xf32> to vector<8x3xf32>
    %14 = arith.mulf %12, %13 : vector<8x3xf32>
    %15 = arith.addf %9, %14 : vector<8x3xf32>
    %16 = vector.extract_strided_slice %0 {offsets = [0, 2], sizes = [8, 1], strides = [1, 1]} : vector<8x4xf32> to vector<8x1xf32>
    %17 = vector.extract_strided_slice %1 {offsets = [2, 0], sizes = [1, 3], strides = [1, 1]} : vector<5x3xf32> to vector<1x3xf32>
    %18 = vector.broadcast %16 : vector<8x1xf32> to vector<8x3xf32>
    %19 = vector.broadcast %17 : vector<1x3xf32> to vector<8x3xf32>
    %20 = arith.mulf %18, %19 : vector<8x3xf32>
    %21 = arith.addf %15, %20 : vector<8x3xf32>
    %22 = vector.extract_strided_slice %0 {offsets = [0, 3], sizes = [8, 1], strides = [1, 1]} : vector<8x4xf32> to vector<8x1xf32>
    %23 = vector.extract_strided_slice %1 {offsets = [3, 0], sizes = [1, 3], strides = [1, 1]} : vector<5x3xf32> to vector<1x3xf32>
    %24 = vector.broadcast %22 : vector<8x1xf32> to vector<8x3xf32>
    %25 = vector.broadcast %23 : vector<1x3xf32> to vector<8x3xf32>
    %26 = arith.mulf %24, %25 : vector<8x3xf32>
    %27 = arith.addf %21, %26 : vector<8x3xf32>
    %c0_3 = arith.constant 0 : index
    %c0_4 = arith.constant 0 : index
    %28 = vector.load %arg2[%c0_3, %c0_4] : memref<8x3xf32, #tpu.memory_space<vmem>>, vector<8x3xf32>
    tpu.vector_store %arg2[%c0_3, %c0_4], %27 {strides = array<i32>} : memref<8x3xf32, #tpu.memory_space<vmem>>, vector<8x3xf32>,
    return
  }
}

</mosaic_0001>

<bundles_post_ra>
// kernel: tpu_custom_call.1
= control target key start
LH: loop header
LB: loop body
LE: loop exit
PB: predicated region body
PF: predicated region fallthrough
CT: control target
= control target key end

     0   :  { %v73_v0 = vmov 0   ;;  %v74_v2 = vmov 2   ;;  %v75_v3 = vmov 1   ;;  %v76_v4 = vmov 3   ;;  %s101_s0 = inlined_call_operand.vmem [shape: f32[8,4], index: 0, kind: input, shape index: {}]   ;;  %s102_s1 = inlined_call_operand.vmem [shape: f32[5,3], index: 1, kind: input, shape index: {}]   ;;  %s103_s2 = inlined_call_operand.vmem [shape: f32[8,3], index: 2, kind: output, shape index: {}]  }
   0x1   :  { %68 = vset.pattern.permute.xlu0 %v73_v0  ;;  %v11_v1 = vld [vmem:[%s101_s0] sm:$0xff]  ;;  %70 = vset.pattern.permute.xlu1 %v74_v2  ;;  %v18_v5 = vlaneseq  ;;  %vm58_vm0 = vcmask 23552  }
   0x2   :  { %15 = vperm.xlu0 %68, %v11_v1   ;;  %39 = vperm.xlu1 %70, %v11_v1   ;;  %v12_v8 = vld [vmem:[%s102_s1] sm:$0x1f] }
   0x3   :  { %v19_v6 = vshrl.u32 %v18_v5, 7 }
   0x5   :  { %v20_v7 = vsub.s32 0, %v19_v6  ;;  %v25_v10 = vsub.s32 4, %v19_v6  ;;  %v34_v11 = vsub.s32 1, %v19_v6  ;;  %v44_v13 = vsub.s32 2, %v19_v6 }
   0x6   :  { %69 = vset.pattern.permute.xlu0 %v75_v3  ;;  %71 = vset.pattern.permute.xlu1 %v76_v4  ;;  %v54_v15 = vsub.s32 3, %v19_v6 }
   0x7   :  { %29 = vperm.xlu0 %69, %v11_v1   ;;  %49 = vperm.xlu1 %71, %v11_v1   ;;  %v21_v9 = vrot.slane %v12_v8, %v20_v7  ;;  %v26_v16 = vrot.slane %v12_v8, %v25_v10  ;;  %v35_v18 = vrot.slane %v12_v8, %v34_v11 }
   0x8   :  { %v45_v19 = vrot.slane %v12_v8, %v44_v13  ;;  %v55_v20 = vrot.slane %v12_v8, %v54_v15 }
   0xb   :  { %72 = vset.pattern.permute.xlu0 %v76_v4 }
  0x81   :  { %v16_v12 = vpop.permute.xlu0 %15  ;;  %v40_v14 = vpop.permute.xlu1 %39 }
  0x82   :  { %v22_v17 = vmul.f32 %v21_v9, %v16_v12  ;;  %v46_v25 = vmul.f32 %v45_v19, %v40_v14 }
  0x84   :  { %v27_v23 = vadd.f32 %v26_v16, %v22_v17 }
  0x86   :  { %v30_v21 = vpop.permute.xlu0 %29  ;;  %v50_v22 = vpop.permute.xlu1 %49 }
  0x87   :  { %v36_v24 = vmul.f32 %v35_v18, %v30_v21  ;;  %v56_v27 = vmul.f32 %v55_v20, %v50_v22 }
  0x89   :  { %v37_v26 = vadd.f32 %v36_v24, %v27_v23 }
  0x8b   :  { %v47_v28 = vadd.f32 %v46_v25, %v37_v26 }
  0x8d   :  { %v57_v29 = vadd.f32 %v56_v27, %v47_v28 }
  0x8f   :  { %59 = vst.msk [vmem:[%s103_s2] sm:$0xff] %vm58_vm0, %v57_v29 }

</bundles_post_ra>
